<compile_context>
chip_gen: v7x
topology: tpu7x:2x2x1
jax: 0.10.0
libtpu: 0.0.40
codegen_flags: <defaults>
</compile_context>

<pallas_src>
import functools
import math

import jax
import jax.numpy as jnp
from jax.experimental import pallas as pl
from jax.experimental.pallas import tpu as pltpu

BN_EPS = 1e-5


def _dwsep_bn_hswish_kernel(x_ref, wm_ref, bias_ref, o_ref, *, H, W, C, K, B,
                            mxu_dtype):
    """B images per grid step; everything lane-dense in (C, H*W).

    x_ref    : (B, C, H*W)   flattened NCHW images (row-major spatial)
    wm_ref   : (C, K*K*C)    merged per-tap weights:
                             wm[co, t*C + ci] = bn_scale[co]*Wpw[co,ci]*Wdw[ci,t]
    bias_ref : (C, 1)        folded BN bias (beta - running_mean * scale)
    o_ref    : (B, C, H*W)
    """
    HW = H * W
    R = (K - 1) // 2

    # ---- hoisted once per grid step, shared across all B images -----------
    idx = jax.lax.broadcasted_iota(jnp.int32, (C, HW), 1)
    if W & (W - 1) == 0:                          # power-of-two fast path
        row = idx >> (W.bit_length() - 1)
        col = idx & (W - 1)
    else:
        row = idx // W
        col = idx % W
    vmask = {dh: jnp.logical_and(row + dh >= 0, row + dh < H)
             for dh in range(-R, R + 1) if dh != 0}
    hmask = {dw: jnp.logical_and(col + dw >= 0, col + dw < W)
             for dw in range(-R, R + 1) if dw != 0}
    masks = {}
    for dh in range(-R, R + 1):
        for dw in range(-R, R + 1):
            if dh == 0 and dw == 0:
                masks[(dh, dw)] = None
            elif dh == 0:
                masks[(dh, dw)] = hmask[dw]
            elif dw == 0:
                masks[(dh, dw)] = vmask[dh]
            else:
                masks[(dh, dw)] = jnp.logical_and(vmask[dh], hmask[dw])

    wm = wm_ref[...]                              # (C, K*K*C), read once
    bias = bias_ref[...]                          # (C, 1)

    # ---- per-image work (B is small and static -> unrolled) ---------------
    for b in range(B):
        x = x_ref[b].astype(jnp.float32)          # (C, HW)
        taps = []
        for dh in range(-R, R + 1):
            for dw in range(-R, R + 1):
                shift = dh * W + dw               # flattened tap offset
                # s[p] = x[p + shift]; wrap-around positions masked below.
                s = x if shift == 0 else pltpu.roll(x, (-shift) % HW, axis=1)
                m = masks[(dh, dw)]
                if m is not None:                 # true zero-padding at edges
                    s = jnp.where(m, s, 0.0)
                taps.append(s)
        # Single fused (C, K*K*C) @ (K*K*C, HW) MXU contraction per image.
        stacked = jnp.concatenate(taps, axis=0).astype(mxu_dtype)
        y = jnp.dot(wm, stacked, preferred_element_type=jnp.float32)
        y = y + bias                              # (C,1) lane-broadcast
        y = y * jnp.clip(y + 3.0, 0.0, 6.0) * (1.0 / 6.0)   # Hardswish (f32)
        o_ref[b] = y.astype(o_ref.dtype)


def dwconv2d_bn_m_forward(x_nchw, w_dw, w_pw, gamma, beta, run_mean, run_var,
                          *, kernel_size=3, images_per_block=None,
                          mxu_dtype=jnp.bfloat16):
    """Forward of DWConv2d_BN_M (stride=1, eval-mode BN, domain '0').

    x_nchw: (N, C, H, W) -> (N, C, H, W); NCHW layout preserved end-to-end.
    """
    N, C, H, W = x_nchw.shape
    K = kernel_size
    assert K % 2 == 1, "odd kernel_size expected (padding = (K-1)//2)"
    assert w_dw.shape == (C, 1, K, K) and w_pw.shape[:2] == (C, C)
    # TODO(synk): stride > 1 not implemented (module instance under test uses stride=1).
    HW = H * W
    f32 = jnp.float32

    # Free view: NCHW -> (N, C, H*W), native dtype (no wrapper-side cast; any
    # bf16 conversion happens inside the kernel on the already-resident tile).
    x2 = x_nchw.reshape(N, C, HW)

    # Fold eval-mode BN and depthwise weights into per-tap pointwise matrices,
    # laid out as ONE lane-dense 2-D tile: wm2[co, t*C + ci].
    wdw = w_dw[:, 0].reshape(C, K * K).astype(f32)            # (C_in, K*K)
    wpw = w_pw[:, :, 0, 0].astype(f32)                        # (C_out, C_in)
    scale = gamma.astype(f32) * jax.lax.rsqrt(run_var.astype(f32) + BN_EPS)
    bias = beta.astype(f32) - run_mean.astype(f32) * scale
    wpw_f = wpw * scale[:, None]                              # BN scale folded
    wm = wpw_f[None, :, :] * jnp.transpose(wdw)[:, None, :]   # (K*K, C_out, C_in)
    wm2 = jnp.transpose(wm, (1, 0, 2)).reshape(C, K * K * C).astype(mxu_dtype)
    bias2 = bias.reshape(C, 1)

    # Images per grid step: amortize the per-step pipeline overhead, keep
    # >= 2 grid steps so the "parallel" axis shards across both v7x TCs, and
    # keep double-buffered in+out blocks well under the scoped-VMEM default.
    per_image_bytes = C * HW * (x_nchw.dtype.itemsize + 4)    # input + f32 out
    if images_per_block is None:
        vmem_budget = 8 << 20                                 # safe on v5e/v6e/v7x
        cap = max(1, vmem_budget // (2 * per_image_bytes))
        target = min(cap, max(1, N // 2))
        images_per_block = 1
        for d in range(1, N + 1):
            if N % d == 0 and d <= target:
                images_per_block = d
    B = images_per_block
    assert N % B == 0, "images_per_block must divide the batch"

    kernel = functools.partial(_dwsep_bn_hswish_kernel, H=H, W=W, C=C, K=K,
                               B=B, mxu_dtype=mxu_dtype)
    out2 = pl.pallas_call(
        kernel,
        out_shape=jax.ShapeDtypeStruct((N, C, HW), x_nchw.dtype),
        grid_spec=pltpu.PrefetchScalarGridSpec(
            num_scalar_prefetch=0,
            grid=(N // B,),                      # batch blocks shard across TCs
            in_specs=[
                pl.BlockSpec((B, C, HW), lambda n: (n, 0, 0)),
                pl.BlockSpec((C, K * K * C), lambda n: (0, 0)),
                pl.BlockSpec((C, 1), lambda n: (0, 0)),
            ],
            out_specs=pl.BlockSpec((B, C, HW), lambda n: (n, 0, 0)),
        ),
        compiler_params=pltpu.CompilerParams(
            dimension_semantics=("parallel",)),
    )(x2, wm2, bias2)

    return out2.reshape(N, C, H, W)              # free view back to NCHW


def _reference(x_nchw, w_dw, w_pw, gamma, beta, run_mean, run_var):
    """Pure-JAX reference using lax.conv (NCHW, like PyTorch)."""
    C = x_nchw.shape[1]
    dw = jax.lax.conv_general_dilated(
        x_nchw, w_dw, window_strides=(1, 1), padding="SAME",
        feature_group_count=C,
        dimension_numbers=("NCHW", "OIHW", "NCHW"))
    pw = jax.lax.conv_general_dilated(
        dw, w_pw, window_strides=(1, 1), padding="VALID",
        dimension_numbers=("NCHW", "OIHW", "NCHW"))
    scale = (gamma / jnp.sqrt(run_var + BN_EPS)).reshape(1, C, 1, 1)
    shift = (beta - run_mean * gamma / jnp.sqrt(run_var + BN_EPS)).reshape(1, C, 1, 1)
    y = pw * scale + shift
    return y * jnp.clip(y + 3.0, 0.0, 6.0) / 6.0


if __name__ == "__main__":
    # Module config: in_ch = out_ch = 8 (depthwise requires it), kernel_size=3,
    # stride=1, num_domains=1, bn_weight_init=1.  Batch 8 so the image-batching
    # path (B=4 images per grid step, grid=(2,)) is actually exercised.
    N, C, H, W = 8, 8, 16, 16
    K = 3

    key = jax.random.PRNGKey(0)
    k_x, k_dw, k_pw = jax.random.split(key, 3)

    x = jax.random.normal(k_x, (N, C, H, W), jnp.float32)

    # Deterministic init matching the PyTorch module's __init__:
    #   conv weights ~ N(0, sqrt(2 / (kh*kw*out_ch)))
    n_dw = K * K * C
    w_dw = jax.random.normal(k_dw, (C, 1, K, K), jnp.float32) * math.sqrt(2.0 / n_dw)
    n_pw = 1 * 1 * C
    w_pw = jax.random.normal(k_pw, (C, C, 1, 1), jnp.float32) * math.sqrt(2.0 / n_pw)

    # BatchNorm2d params (eval-mode running stats), bn_weight_init = 1.
    gamma = jnp.ones((C,), jnp.float32)
    beta = jnp.zeros((C,), jnp.float32)
    run_mean = jnp.zeros((C,), jnp.float32)
    run_var = jnp.ones((C,), jnp.float32)

    ref = _reference(x, w_dw, w_pw, gamma, beta, run_mean, run_var)

    # 1) Bit-accurate semantics check (f32 MXU inputs).
    out_f32 = dwconv2d_bn_m_forward(x, w_dw, w_pw, gamma, beta, run_mean,
                                    run_var, kernel_size=K,
                                    mxu_dtype=jnp.float32)
    out_f32 = jax.block_until_ready(out_f32)
    assert out_f32.shape == (N, C, H, W)
    assert jnp.allclose(out_f32, ref, atol=1e-4, rtol=1e-4), "f32 mismatch"

    # 2) Default performance path: bf16 MXU inputs, f32 accumulation.
    out_bf16 = dwconv2d_bn_m_forward(x, w_dw, w_pw, gamma, beta, run_mean,
                                     run_var, kernel_size=K)
    out_bf16 = jax.block_until_ready(out_bf16)
    assert out_bf16.shape == (N, C, H, W)
    assert jnp.allclose(out_bf16, ref, atol=5e-2, rtol=5e-2), "bf16 mismatch"

    print("KERNEL_OK")
</pallas_src>

<mosaic_0001>
module attributes {stable_mosaic.version = 11 : i64} {
  func.func @_dwsep_bn_hswish_kernel(%arg0: i32, %arg1: memref<4x8x256xf32, #tpu.memory_space<vmem>>, %arg2: memref<8x72xf32, #tpu.memory_space<vmem>>, %arg3: memref<8x1xf32, #tpu.memory_space<vmem>>, %arg4: memref<4x8x256xf32, #tpu.memory_space<vmem>>) attributes {dimension_semantics = [#tpu.dimension_semantics<parallel>], iteration_bounds = array<i64: 2>, scalar_prefetch = 0 : i64, scratch_operands = 0 : i64, tpu.core_type = #tpu.core_type<tc>, window_params = [{transform_indices = @transform_0, window_bounds = array<i64: 4, 8, 256>}, {pipeline_mode = #tpu.pipeline_mode<synchronous>, transform_indices = @transform_1, window_bounds = array<i64: 8, 72>}, {pipeline_mode = #tpu.pipeline_mode<synchronous>, transform_indices = @transform_2, window_bounds = array<i64: 8, 1>}, {transform_indices = @transform_3, window_bounds = array<i64: 4, 8, 256>}]} {
    %0 = tpu.iota {dimensions = array<i32: 1>} : vector<8x256xi32>
    %c4_i32 = arith.constant 4 : i32
    %1 = vector.broadcast %c4_i32 : i32 to vector<8x256xi32>
    %2 = arith.shrsi %0, %1 : vector<8x256xi32>
    %c15_i32 = arith.constant 15 : i32
    %3 = vector.broadcast %c15_i32 : i32 to vector<8x256xi32>
    %4 = arith.andi %0, %3 : vector<8x256xi32>
    %c-1_i32 = arith.constant -1 : i32
    %5 = vector.broadcast %c-1_i32 : i32 to vector<8x256xi32>
    %6 = arith.addi %2, %5 : vector<8x256xi32>
    %c0_i32 = arith.constant 0 : i32
    %7 = vector.broadcast %c0_i32 : i32 to vector<8x256xi32>
    %8 = arith.cmpi sge, %6, %7 : vector<8x256xi32>
    %c-1_i32_0 = arith.constant -1 : i32
    %9 = vector.broadcast %c-1_i32_0 : i32 to vector<8x256xi32>
    %10 = arith.addi %2, %9 : vector<8x256xi32>
    %c16_i32 = arith.constant 16 : i32
    %11 = vector.broadcast %c16_i32 : i32 to vector<8x256xi32>
    %12 = arith.cmpi slt, %10, %11 : vector<8x256xi32>
    %13 = arith.andi %8, %12 : vector<8x256xi1>
    %c1_i32 = arith.constant 1 : i32
    %14 = vector.broadcast %c1_i32 : i32 to vector<8x256xi32>
    %15 = arith.addi %2, %14 : vector<8x256xi32>
    %c0_i32_1 = arith.constant 0 : i32
    %16 = vector.broadcast %c0_i32_1 : i32 to vector<8x256xi32>
    %17 = arith.cmpi sge, %15, %16 : vector<8x256xi32>
    %c1_i32_2 = arith.constant 1 : i32
    %18 = vector.broadcast %c1_i32_2 : i32 to vector<8x256xi32>
    %19 = arith.addi %2, %18 : vector<8x256xi32>
    %c16_i32_3 = arith.constant 16 : i32
    %20 = vector.broadcast %c16_i32_3 : i32 to vector<8x256xi32>
    %21 = arith.cmpi slt, %19, %20 : vector<8x256xi32>
    %22 = arith.andi %17, %21 : vector<8x256xi1>
    %c-1_i32_4 = arith.constant -1 : i32
    %23 = vector.broadcast %c-1_i32_4 : i32 to vector<8x256xi32>
    %24 = arith.addi %4, %23 : vector<8x256xi32>
    %c0_i32_5 = arith.constant 0 : i32
    %25 = vector.broadcast %c0_i32_5 : i32 to vector<8x256xi32>
    %26 = arith.cmpi sge, %24, %25 : vector<8x256xi32>
    %c-1_i32_6 = arith.constant -1 : i32
    %27 = vector.broadcast %c-1_i32_6 : i32 to vector<8x256xi32>
    %28 = arith.addi %4, %27 : vector<8x256xi32>
    %c16_i32_7 = arith.constant 16 : i32
    %29 = vector.broadcast %c16_i32_7 : i32 to vector<8x256xi32>
    %30 = arith.cmpi slt, %28, %29 : vector<8x256xi32>
    %31 = arith.andi %26, %30 : vector<8x256xi1>
    %c1_i32_8 = arith.constant 1 : i32
    %32 = vector.broadcast %c1_i32_8 : i32 to vector<8x256xi32>
    %33 = arith.addi %4, %32 : vector<8x256xi32>
    %c0_i32_9 = arith.constant 0 : i32
    %34 = vector.broadcast %c0_i32_9 : i32 to vector<8x256xi32>
    %35 = arith.cmpi sge, %33, %34 : vector<8x256xi32>
    %c1_i32_10 = arith.constant 1 : i32
    %36 = vector.broadcast %c1_i32_10 : i32 to vector<8x256xi32>
    %37 = arith.addi %4, %36 : vector<8x256xi32>
    %c16_i32_11 = arith.constant 16 : i32
    %38 = vector.broadcast %c16_i32_11 : i32 to vector<8x256xi32>
    %39 = arith.cmpi slt, %37, %38 : vector<8x256xi32>
    %40 = arith.andi %35, %39 : vector<8x256xi1>
    %41 = arith.andi %13, %31 : vector<8x256xi1>
    %42 = arith.andi %13, %40 : vector<8x256xi1>
    %43 = arith.andi %22, %31 : vector<8x256xi1>
    %44 = arith.andi %22, %40 : vector<8x256xi1>
    %c0 = arith.constant 0 : index
    %c0_12 = arith.constant 0 : index
    %45 = vector.load %arg2[%c0, %c0_12] : memref<8x72xf32, #tpu.memory_space<vmem>>, vector<8x72xf32>
    %c0_13 = arith.constant 0 : index
    %c0_14 = arith.constant 0 : index
    %46 = vector.load %arg3[%c0_13, %c0_14] : memref<8x1xf32, #tpu.memory_space<vmem>>, vector<8x1xf32>
    %c0_15 = arith.constant 0 : index
    %c0_16 = arith.constant 0 : index
    %c0_17 = arith.constant 0 : index
    %47 = vector.load %arg1[%c0_15, %c0_16, %c0_17] : memref<4x8x256xf32, #tpu.memory_space<vmem>>, vector<1x8x256xf32>
    %48 = vector.shape_cast %47 : vector<1x8x256xf32> to vector<8x256xf32>
    %c17_i32 = arith.constant 17 : i32
    %49 = tpu.dynamic_rotate %48 by %c17_i32 dim 1 : vector<8x256xf32>, i32 -> vector<8x256xf32>
    %cst = arith.constant 0.000000e+00 : f32
    %50 = vector.broadcast %cst : f32 to vector<8x256xf32>
    %51 = arith.select %41, %49, %50 : vector<8x256xi1>, vector<8x256xf32>
    %c16_i32_18 = arith.constant 16 : i32
    %52 = tpu.dynamic_rotate %48 by %c16_i32_18 dim 1 : vector<8x256xf32>, i32 -> vector<8x256xf32>
    %cst_19 = arith.constant 0.000000e+00 : f32
    %53 = vector.broadcast %cst_19 : f32 to vector<8x256xf32>
    %54 = arith.select %13, %52, %53 : vector<8x256xi1>, vector<8x256xf32>
    %c15_i32_20 = arith.constant 15 : i32
    %55 = tpu.dynamic_rotate %48 by %c15_i32_20 dim 1 : vector<8x256xf32>, i32 -> vector<8x256xf32>
    %cst_21 = arith.constant 0.000000e+00 : f32
    %56 = vector.broadcast %cst_21 : f32 to vector<8x256xf32>
    %57 = arith.select %42, %55, %56 : vector<8x256xi1>, vector<8x256xf32>
    %c1_i32_22 = arith.constant 1 : i32
    %58 = tpu.dynamic_rotate %48 by %c1_i32_22 dim 1 : vector<8x256xf32>, i32 -> vector<8x256xf32>
    %cst_23 = arith.constant 0.000000e+00 : f32
    %59 = vector.broadcast %cst_23 : f32 to vector<8x256xf32>
    %60 = arith.select %31, %58, %59 : vector<8x256xi1>, vector<8x256xf32>
    %c255_i32 = arith.constant 255 : i32
    %61 = tpu.dynamic_rotate %48 by %c255_i32 dim 1 : vector<8x256xf32>, i32 -> vector<8x256xf32>
    %cst_24 = arith.constant 0.000000e+00 : f32
    %62 = vector.broadcast %cst_24 : f32 to vector<8x256xf32>
    %63 = arith.select %40, %61, %62 : vector<8x256xi1>, vector<8x256xf32>
    %c241_i32 = arith.constant 241 : i32
    %64 = tpu.dynamic_rotate %48 by %c241_i32 dim 1 : vector<8x256xf32>, i32 -> vector<8x256xf32>
    %cst_25 = arith.constant 0.000000e+00 : f32
    %65 = vector.broadcast %cst_25 : f32 to vector<8x256xf32>
    %66 = arith.select %43, %64, %65 : vector<8x256xi1>, vector<8x256xf32>
    %c240_i32 = arith.constant 240 : i32
    %67 = tpu.dynamic_rotate %48 by %c240_i32 dim 1 : vector<8x256xf32>, i32 -> vector<8x256xf32>
    %cst_26 = arith.constant 0.000000e+00 : f32
    %68 = vector.broadcast %cst_26 : f32 to vector<8x256xf32>
    %69 = arith.select %22, %67, %68 : vector<8x256xi1>, vector<8x256xf32>
    %c239_i32 = arith.constant 239 : i32
    %70 = tpu.dynamic_rotate %48 by %c239_i32 dim 1 : vector<8x256xf32>, i32 -> vector<8x256xf32>
    %cst_27 = arith.constant 0.000000e+00 : f32
    %71 = vector.broadcast %cst_27 : f32 to vector<8x256xf32>
    %72 = arith.select %44, %70, %71 : vector<8x256xi1>, vector<8x256xf32>
    %73 = tpu.concatenate %51, %54, %57, %60, %48, %63, %66, %69, %72 in 0 : vector<8x256xf32>, vector<8x256xf32>, vector<8x256xf32>, vector<8x256xf32>, vector<8x256xf32>, vector<8x256xf32>, vector<8x256xf32>, vector<8x256xf32>, vector<8x256xf32> -> vector<72x256xf32>
    %cst_28 = arith.constant dense<0.000000e+00> : vector<8x256xf32>
    %74 = tpu.matmul %45, %73, %cst_28 {dimension_numbers = #tpu.dot_dimension_numbers<[1], [0], [0], [1], [0, 0, 1, 1], [], []>} : vector<8x72xf32>, vector<72x256xf32>, vector<8x256xf32> -> vector<8x256xf32>
    %75 = vector.broadcast %46 : vector<8x1xf32> to vector<8x256xf32>
    %76 = arith.addf %74, %75 : vector<8x256xf32>
    %cst_29 = arith.constant 3.000000e+00 : f32
    %77 = vector.broadcast %cst_29 : f32 to vector<8x256xf32>
    %78 = arith.addf %76, %77 : vector<8x256xf32>
    %cst_30 = arith.constant 0.000000e+00 : f32
    %cst_31 = arith.constant 6.000000e+00 : f32
    %79 = vector.broadcast %cst_30 : f32 to vector<8x256xf32>
    %80 = arith.maximumf %79, %78 : vector<8x256xf32>
    %81 = vector.broadcast %cst_31 : f32 to vector<8x256xf32>
    %82 = arith.minimumf %81, %80 : vector<8x256xf32>
    %83 = arith.mulf %76, %82 : vector<8x256xf32>
    %cst_32 = arith.constant 0.166666672 : f32
    %84 = vector.broadcast %cst_32 : f32 to vector<8x256xf32>
    %85 = arith.mulf %83, %84 : vector<8x256xf32>
    %c0_33 = arith.constant 0 : index
    %c0_34 = arith.constant 0 : index
    %c0_35 = arith.constant 0 : index
    %86 = vector.load %arg4[%c0_33, %c0_34, %c0_35] : memref<4x8x256xf32, #tpu.memory_space<vmem>>, vector<1x8x256xf32>
    %87 = vector.shape_cast %86 : vector<1x8x256xf32> to vector<8x256xf32>
    %88 = vector.shape_cast %85 : vector<8x256xf32> to vector<1x8x256xf32>
    tpu.vector_store %arg4[%c0_33, %c0_34, %c0_35], %88 {strides = array<i32>} : memref<4x8x256xf32, #tpu.memory_space<vmem>>, vector<1x8x256xf32>,
    %c1 = arith.constant 1 : index
    %c0_36 = arith.constant 0 : index
    %c0_37 = arith.constant 0 : index
    %89 = vector.load %arg1[%c1, %c0_36, %c0_37] : memref<4x8x256xf32, #tpu.memory_space<vmem>>, vector<1x8x256xf32>
    %90 = vector.shape_cast %89 : vector<1x8x256xf32> to vector<8x256xf32>
    %c17_i32_38 = arith.constant 17 : i32
    %91 = tpu.dynamic_rotate %90 by %c17_i32_38 dim 1 : vector<8x256xf32>, i32 -> vector<8x256xf32>
    %cst_39 = arith.constant 0.000000e+00 : f32
    %92 = vector.broadcast %cst_39 : f32 to vector<8x256xf32>
    %93 = arith.select %41, %91, %92 : vector<8x256xi1>, vector<8x256xf32>
    %c16_i32_40 = arith.constant 16 : i32
    %94 = tpu.dynamic_rotate %90 by %c16_i32_40 dim 1 : vector<8x256xf32>, i32 -> vector<8x256xf32>
    %cst_41 = arith.constant 0.000000e+00 : f32
    %95 = vector.broadcast %cst_41 : f32 to vector<8x256xf32>
    %96 = arith.select %13, %94, %95 : vector<8x256xi1>, vector<8x256xf32>
    %c15_i32_42 = arith.constant 15 : i32
    %97 = tpu.dynamic_rotate %90 by %c15_i32_42 dim 1 : vector<8x256xf32>, i32 -> vector<8x256xf32>
    %cst_43 = arith.constant 0.000000e+00 : f32
    %98 = vector.broadcast %cst_43 : f32 to vector<8x256xf32>
    %99 = arith.select %42, %97, %98 : vector<8x256xi1>, vector<8x256xf32>
    %c1_i32_44 = arith.constant 1 : i32
    %100 = tpu.dynamic_rotate %90 by %c1_i32_44 dim 1 : vector<8x256xf32>, i32 -> vector<8x256xf32>
    %cst_45 = arith.constant 0.000000e+00 : f32
    %101 = vector.broadcast %cst_45 : f32 to vector<8x256xf32>
    %102 = arith.select %31, %100, %101 : vector<8x256xi1>, vector<8x256xf32>
    %c255_i32_46 = arith.constant 255 : i32
    %103 = tpu.dynamic_rotate %90 by %c255_i32_46 dim 1 : vector<8x256xf32>, i32 -> vector<8x256xf32>
    %cst_47 = arith.constant 0.000000e+00 : f32
    %104 = vector.broadcast %cst_47 : f32 to vector<8x256xf32>
    %105 = arith.select %40, %103, %104 : vector<8x256xi1>, vector<8x256xf32>
    %c241_i32_48 = arith.constant 241 : i32
    %106 = tpu.dynamic_rotate %90 by %c241_i32_48 dim 1 : vector<8x256xf32>, i32 -> vector<8x256xf32>
    %cst_49 = arith.constant 0.000000e+00 : f32
    %107 = vector.broadcast %cst_49 : f32 to vector<8x256xf32>
    %108 = arith.select %43, %106, %107 : vector<8x256xi1>, vector<8x256xf32>
    %c240_i32_50 = arith.constant 240 : i32
    %109 = tpu.dynamic_rotate %90 by %c240_i32_50 dim 1 : vector<8x256xf32>, i32 -> vector<8x256xf32>
    %cst_51 = arith.constant 0.000000e+00 : f32
    %110 = vector.broadcast %cst_51 : f32 to vector<8x256xf32>
    %111 = arith.select %22, %109, %110 : vector<8x256xi1>, vector<8x256xf32>
    %c239_i32_52 = arith.constant 239 : i32
    %112 = tpu.dynamic_rotate %90 by %c239_i32_52 dim 1 : vector<8x256xf32>, i32 -> vector<8x256xf32>
    %cst_53 = arith.constant 0.000000e+00 : f32
    %113 = vector.broadcast %cst_53 : f32 to vector<8x256xf32>
    %114 = arith.select %44, %112, %113 : vector<8x256xi1>, vector<8x256xf32>
    %115 = tpu.concatenate %93, %96, %99, %102, %90, %105, %108, %111, %114 in 0 : vector<8x256xf32>, vector<8x256xf32>, vector<8x256xf32>, vector<8x256xf32>, vector<8x256xf32>, vector<8x256xf32>, vector<8x256xf32>, vector<8x256xf32>, vector<8x256xf32> -> vector<72x256xf32>
    %cst_54 = arith.constant dense<0.000000e+00> : vector<8x256xf32>
    %116 = tpu.matmul %45, %115, %cst_54 {dimension_numbers = #tpu.dot_dimension_numbers<[1], [0], [0], [1], [0, 0, 1, 1], [], []>} : vector<8x72xf32>, vector<72x256xf32>, vector<8x256xf32> -> vector<8x256xf32>
    %117 = vector.broadcast %46 : vector<8x1xf32> to vector<8x256xf32>
    %118 = arith.addf %116, %117 : vector<8x256xf32>
    %cst_55 = arith.constant 3.000000e+00 : f32
    %119 = vector.broadcast %cst_55 : f32 to vector<8x256xf32>
    %120 = arith.addf %118, %119 : vector<8x256xf32>
    %cst_56 = arith.constant 0.000000e+00 : f32
    %cst_57 = arith.constant 6.000000e+00 : f32
    %121 = vector.broadcast %cst_56 : f32 to vector<8x256xf32>
    %122 = arith.maximumf %121, %120 : vector<8x256xf32>
    %123 = vector.broadcast %cst_57 : f32 to vector<8x256xf32>
    %124 = arith.minimumf %123, %122 : vector<8x256xf32>
    %125 = arith.mulf %118, %124 : vector<8x256xf32>
    %cst_58 = arith.constant 0.166666672 : f32
    %126 = vector.broadcast %cst_58 : f32 to vector<8x256xf32>
    %127 = arith.mulf %125, %126 : vector<8x256xf32>
    %c1_59 = arith.constant 1 : index
    %c0_60 = arith.constant 0 : index
    %c0_61 = arith.constant 0 : index
    %128 = vector.load %arg4[%c1_59, %c0_60, %c0_61] : memref<4x8x256xf32, #tpu.memory_space<vmem>>, vector<1x8x256xf32>
    %129 = vector.shape_cast %128 : vector<1x8x256xf32> to vector<8x256xf32>
    %130 = vector.shape_cast %127 : vector<8x256xf32> to vector<1x8x256xf32>
    tpu.vector_store %arg4[%c1_59, %c0_60, %c0_61], %130 {strides = array<i32>} : memref<4x8x256xf32, #tpu.memory_space<vmem>>, vector<1x8x256xf32>,
    %c2 = arith.constant 2 : index
    %c0_62 = arith.constant 0 : index
    %c0_63 = arith.constant 0 : index
    %131 = vector.load %arg1[%c2, %c0_62, %c0_63] : memref<4x8x256xf32, #tpu.memory_space<vmem>>, vector<1x8x256xf32>
    %132 = vector.shape_cast %131 : vector<1x8x256xf32> to vector<8x256xf32>
    %c17_i32_64 = arith.constant 17 : i32
    %133 = tpu.dynamic_rotate %132 by %c17_i32_64 dim 1 : vector<8x256xf32>, i32 -> vector<8x256xf32>
    %cst_65 = arith.constant 0.000000e+00 : f32
    %134 = vector.broadcast %cst_65 : f32 to vector<8x256xf32>
    %135 = arith.select %41, %133, %134 : vector<8x256xi1>, vector<8x256xf32>
    %c16_i32_66 = arith.constant 16 : i32
    %136 = tpu.dynamic_rotate %132 by %c16_i32_66 dim 1 : vector<8x256xf32>, i32 -> vector<8x256xf32>
    %cst_67 = arith.constant 0.000000e+00 : f32
    %137 = vector.broadcast %cst_67 : f32 to vector<8x256xf32>
    %138 = arith.select %13, %136, %137 : vector<8x256xi1>, vector<8x256xf32>
    %c15_i32_68 = arith.constant 15 : i32
    %139 = tpu.dynamic_rotate %132 by %c15_i32_68 dim 1 : vector<8x256xf32>, i32 -> vector<8x256xf32>
    %cst_69 = arith.constant 0.000000e+00 : f32
    %140 = vector.broadcast %cst_69 : f32 to vector<8x256xf32>
    %141 = arith.select %42, %139, %140 : vector<8x256xi1>, vector<8x256xf32>
    %c1_i32_70 = arith.constant 1 : i32
    %142 = tpu.dynamic_rotate %132 by %c1_i32_70 dim 1 : vector<8x256xf32>, i32 -> vector<8x256xf32>
    %cst_71 = arith.constant 0.000000e+00 : f32
    %143 = vector.broadcast %cst_71 : f32 to vector<8x256xf32>
    %144 = arith.select %31, %142, %143 : vector<8x256xi1>, vector<8x256xf32>
    %c255_i32_72 = arith.constant 255 : i32
    %145 = tpu.dynamic_rotate %132 by %c255_i32_72 dim 1 : vector<8x256xf32>, i32 -> vector<8x256xf32>
    %cst_73 = arith.constant 0.000000e+00 : f32
    %146 = vector.broadcast %cst_73 : f32 to vector<8x256xf32>
    %147 = arith.select %40, %145, %146 : vector<8x256xi1>, vector<8x256xf32>
    %c241_i32_74 = arith.constant 241 : i32
    %148 = tpu.dynamic_rotate %132 by %c241_i32_74 dim 1 : vector<8x256xf32>, i32 -> vector<8x256xf32>
    %cst_75 = arith.constant 0.000000e+00 : f32
    %149 = vector.broadcast %cst_75 : f32 to vector<8x256xf32>
    %150 = arith.select %43, %148, %149 : vector<8x256xi1>, vector<8x256xf32>
    %c240_i32_76 = arith.constant 240 : i32
    %151 = tpu.dynamic_rotate %132 by %c240_i32_76 dim 1 : vector<8x256xf32>, i32 -> vector<8x256xf32>
    %cst_77 = arith.constant 0.000000e+00 : f32
    %152 = vector.broadcast %cst_77 : f32 to vector<8x256xf32>
    %153 = arith.select %22, %151, %152 : vector<8x256xi1>, vector<8x256xf32>
    %c239_i32_78 = arith.constant 239 : i32
    %154 = tpu.dynamic_rotate %132 by %c239_i32_78 dim 1 : vector<8x256xf32>, i32 -> vector<8x256xf32>
    %cst_79 = arith.constant 0.000000e+00 : f32
    %155 = vector.broadcast %cst_79 : f32 to vector<8x256xf32>
    %156 = arith.select %44, %154, %155 : vector<8x256xi1>, vector<8x256xf32>
    %157 = tpu.concatenate %135, %138, %141, %144, %132, %147, %150, %153, %156 in 0 : vector<8x256xf32>, vector<8x256xf32>, vector<8x256xf32>, vector<8x256xf32>, vector<8x256xf32>, vector<8x256xf32>, vector<8x256xf32>, vector<8x256xf32>, vector<8x256xf32> -> vector<72x256xf32>
    %cst_80 = arith.constant dense<0.000000e+00> : vector<8x256xf32>
    %158 = tpu.matmul %45, %157, %cst_80 {dimension_numbers = #tpu.dot_dimension_numbers<[1], [0], [0], [1], [0, 0, 1, 1], [], []>} : vector<8x72xf32>, vector<72x256xf32>, vector<8x256xf32> -> vector<8x256xf32>
    %159 = vector.broadcast %46 : vector<8x1xf32> to vector<8x256xf32>
    %160 = arith.addf %158, %159 : vector<8x256xf32>
    %cst_81 = arith.constant 3.000000e+00 : f32
    %161 = vector.broadcast %cst_81 : f32 to vector<8x256xf32>
    %162 = arith.addf %160, %161 : vector<8x256xf32>
    %cst_82 = arith.constant 0.000000e+00 : f32
    %cst_83 = arith.constant 6.000000e+00 : f32
    %163 = vector.broadcast %cst_82 : f32 to vector<8x256xf32>
    %164 = arith.maximumf %163, %162 : vector<8x256xf32>
    %165 = vector.broadcast %cst_83 : f32 to vector<8x256xf32>
    %166 = arith.minimumf %165, %164 : vector<8x256xf32>
    %167 = arith.mulf %160, %166 : vector<8x256xf32>
    %cst_84 = arith.constant 0.166666672 : f32
    %168 = vector.broadcast %cst_84 : f32 to vector<8x256xf32>
    %169 = arith.mulf %167, %168 : vector<8x256xf32>
    %c2_85 = arith.constant 2 : index
    %c0_86 = arith.constant 0 : index
    %c0_87 = arith.constant 0 : index
    %170 = vector.load %arg4[%c2_85, %c0_86, %c0_87] : memref<4x8x256xf32, #tpu.memory_space<vmem>>, vector<1x8x256xf32>
    %171 = vector.shape_cast %170 : vector<1x8x256xf32> to vector<8x256xf32>
    %172 = vector.shape_cast %169 : vector<8x256xf32> to vector<1x8x256xf32>
    tpu.vector_store %arg4[%c2_85, %c0_86, %c0_87], %172 {strides = array<i32>} : memref<4x8x256xf32, #tpu.memory_space<vmem>>, vector<1x8x256xf32>,
    %c3 = arith.constant 3 : index
    %c0_88 = arith.constant 0 : index
    %c0_89 = arith.constant 0 : index
    %173 = vector.load %arg1[%c3, %c0_88, %c0_89] : memref<4x8x256xf32, #tpu.memory_space<vmem>>, vector<1x8x256xf32>
    %174 = vector.shape_cast %173 : vector<1x8x256xf32> to vector<8x256xf32>
    %c17_i32_90 = arith.constant 17 : i32
    %175 = tpu.dynamic_rotate %174 by %c17_i32_90 dim 1 : vector<8x256xf32>, i32 -> vector<8x256xf32>
    %cst_91 = arith.constant 0.000000e+00 : f32
    %176 = vector.broadcast %cst_91 : f32 to vector<8x256xf32>
    %177 = arith.select %41, %175, %176 : vector<8x256xi1>, vector<8x256xf32>
    %c16_i32_92 = arith.constant 16 : i32
    %178 = tpu.dynamic_rotate %174 by %c16_i32_92 dim 1 : vector<8x256xf32>, i32 -> vector<8x256xf32>
    %cst_93 = arith.constant 0.000000e+00 : f32
    %179 = vector.broadcast %cst_93 : f32 to vector<8x256xf32>
    %180 = arith.select %13, %178, %179 : vector<8x256xi1>, vector<8x256xf32>
    %c15_i32_94 = arith.constant 15 : i32
    %181 = tpu.dynamic_rotate %174 by %c15_i32_94 dim 1 : vector<8x256xf32>, i32 -> vector<8x256xf32>
    %cst_95 = arith.constant 0.000000e+00 : f32
    %182 = vector.broadcast %cst_95 : f32 to vector<8x256xf32>
    %183 = arith.select %42, %181, %182 : vector<8x256xi1>, vector<8x256xf32>
    %c1_i32_96 = arith.constant 1 : i32
    %184 = tpu.dynamic_rotate %174 by %c1_i32_96 dim 1 : vector<8x256xf32>, i32 -> vector<8x256xf32>
    %cst_97 = arith.constant 0.000000e+00 : f32
    %185 = vector.broadcast %cst_97 : f32 to vector<8x256xf32>
    %186 = arith.select %31, %184, %185 : vector<8x256xi1>, vector<8x256xf32>
    %c255_i32_98 = arith.constant 255 : i32
    %187 = tpu.dynamic_rotate %174 by %c255_i32_98 dim 1 : vector<8x256xf32>, i32 -> vector<8x256xf32>
    %cst_99 = arith.constant 0.000000e+00 : f32
    %188 = vector.broadcast %cst_99 : f32 to vector<8x256xf32>
    %189 = arith.select %40, %187, %188 : vector<8x256xi1>, vector<8x256xf32>
    %c241_i32_100 = arith.constant 241 : i32
    %190 = tpu.dynamic_rotate %174 by %c241_i32_100 dim 1 : vector<8x256xf32>, i32 -> vector<8x256xf32>
    %cst_101 = arith.constant 0.000000e+00 : f32
    %191 = vector.broadcast %cst_101 : f32 to vector<8x256xf32>
    %192 = arith.select %43, %190, %191 : vector<8x256xi1>, vector<8x256xf32>
    %c240_i32_102 = arith.constant 240 : i32
    %193 = tpu.dynamic_rotate %174 by %c240_i32_102 dim 1 : vector<8x256xf32>, i32 -> vector<8x256xf32>
    %cst_103 = arith.constant 0.000000e+00 : f32
    %194 = vector.broadcast %cst_103 : f32 to vector<8x256xf32>
    %195 = arith.select %22, %193, %194 : vector<8x256xi1>, vector<8x256xf32>
    %c239_i32_104 = arith.constant 239 : i32
    %196 = tpu.dynamic_rotate %174 by %c239_i32_104 dim 1 : vector<8x256xf32>, i32 -> vector<8x256xf32>
    %cst_105 = arith.constant 0.000000e+00 : f32
    %197 = vector.broadcast %cst_105 : f32 to vector<8x256xf32>
    %198 = arith.select %44, %196, %197 : vector<8x256xi1>, vector<8x256xf32>
    %199 = tpu.concatenate %177, %180, %183, %186, %174, %189, %192, %195, %198 in 0 : vector<8x256xf32>, vector<8x256xf32>, vector<8x256xf32>, vector<8x256xf32>, vector<8x256xf32>, vector<8x256xf32>, vector<8x256xf32>, vector<8x256xf32>, vector<8x256xf32> -> vector<72x256xf32>
    %cst_106 = arith.constant dense<0.000000e+00> : vector<8x256xf32>
    %200 = tpu.matmul %45, %199, %cst_106 {dimension_numbers = #tpu.dot_dimension_numbers<[1], [0], [0], [1], [0, 0, 1, 1], [], []>} : vector<8x72xf32>, vector<72x256xf32>, vector<8x256xf32> -> vector<8x256xf32>
    %201 = vector.broadcast %46 : vector<8x1xf32> to vector<8x256xf32>
    %202 = arith.addf %200, %201 : vector<8x256xf32>
    %cst_107 = arith.constant 3.000000e+00 : f32
    %203 = vector.broadcast %cst_107 : f32 to vector<8x256xf32>
    %204 = arith.addf %202, %203 : vector<8x256xf32>
    %cst_108 = arith.constant 0.000000e+00 : f32
    %cst_109 = arith.constant 6.000000e+00 : f32
    %205 = vector.broadcast %cst_108 : f32 to vector<8x256xf32>
    %206 = arith.maximumf %205, %204 : vector<8x256xf32>
    %207 = vector.broadcast %cst_109 : f32 to vector<8x256xf32>
    %208 = arith.minimumf %207, %206 : vector<8x256xf32>
    %209 = arith.mulf %202, %208 : vector<8x256xf32>
    %cst_110 = arith.constant 0.166666672 : f32
    %210 = vector.broadcast %cst_110 : f32 to vector<8x256xf32>
    %211 = arith.mulf %209, %210 : vector<8x256xf32>
    %c3_111 = arith.constant 3 : index
    %c0_112 = arith.constant 0 : index
    %c0_113 = arith.constant 0 : index
    %212 = vector.load %arg4[%c3_111, %c0_112, %c0_113] : memref<4x8x256xf32, #tpu.memory_space<vmem>>, vector<1x8x256xf32>
    %213 = vector.shape_cast %212 : vector<1x8x256xf32> to vector<8x256xf32>
    %214 = vector.shape_cast %211 : vector<8x256xf32> to vector<1x8x256xf32>
    tpu.vector_store %arg4[%c3_111, %c0_112, %c0_113], %214 {strides = array<i32>} : memref<4x8x256xf32, #tpu.memory_space<vmem>>, vector<1x8x256xf32>,
    return
  }
  func.func @transform_0(%arg0: i32) -> (i32, i32, i32) {
    %c0_i32 = arith.constant 0 : i32
    %c0_i32_0 = arith.constant 0 : i32
    %c0_i32_1 = arith.constant 0 : i32
    return %arg0, %c0_i32, %c0_i32_0 : i32, i32, i32
  }
  func.func @transform_1(%arg0: i32) -> (i32, i32) {
    %c0_i32 = arith.constant 0 : i32
    %c0_i32_0 = arith.constant 0 : i32
    %c0_i32_1 = arith.constant 0 : i32
    return %c0_i32, %c0_i32_0 : i32, i32
  }
  func.func @transform_2(%arg0: i32) -> (i32, i32) {
    %c0_i32 = arith.constant 0 : i32
    %c0_i32_0 = arith.constant 0 : i32
    %c0_i32_1 = arith.constant 0 : i32
    return %c0_i32, %c0_i32_0 : i32, i32
  }
  func.func @transform_3(%arg0: i32) -> (i32, i32, i32) {
    %c0_i32 = arith.constant 0 : i32
    %c0_i32_0 = arith.constant 0 : i32
    %c0_i32_1 = arith.constant 0 : i32
    return %arg0, %c0_i32, %c0_i32_0 : i32, i32, i32
  }
}

</mosaic_0001>

<bundles_post_ra>
// kernel: tpu_custom_call.1
= control target key start
LH: loop header
LB: loop body
LE: loop exit
PB: predicated region body
PF: predicated region fallthrough
CT: control target
= control target key end

     0   :  { %8 = vsyncpa [#allocation3], 0  ;;  %s2136_s0 = inlined_call_operand.hbm [shape: f32[8,8,256], index: 0, kind: input, shape index: {}]   ;;  %s2137_s1 = inlined_call_operand.vmem [shape: f32[8,72], index: 1, kind: input, shape index: {}]   ;;  %s2138_s2 = inlined_call_operand.vmem [shape: f32[8,1], index: 2, kind: input, shape index: {}]   ;;  %s2139_s3 = inlined_call_operand.hbm [shape: f32[8,8,256], index: 3, kind: output, shape index: {}]  }
   0x1   :  { %10 = vsyncpa [#allocation3 + $0x1], 0 }
   0x2   :  { %11 = vsyncpa [#allocation4], 0 }
   0x3   :  { %13 = vsyncpa [#allocation4 + $0x1], 0  ;;  %s1479_s12 = smov 0   ;;  %s1481_s13 = smov 0  }
   0x4   :  { %s1483_s14 = smov 0   ;;  %s1485_s15 = smov 0  }
   0x5 LB: > { %s1500_s16 = sadd.s32 4294967295, %s1441_s15   ;;  %s948_s17 = sadd.s32 4294967294, %s1441_s15   ;;  %s1441_s15 = sphi %s1485_s15, %s2228_s15   ;;  %s1437_s14 = sphi %s1483_s14, %s2227_s14   ;;  %s1433_s13 = sphi %s1481_s13, %s2226_s13   ;;  %s1429_s12 = sphi %s1479_s12, %s2225_s12  }
   0x6   : > { %s1504_s18 = sadd.s32 1, %s1441_s15   ;;  %s26_s19 = sadd.s32 1, %s1437_s14 }
   0x7   : > { %s23_s20 = ssub.s32 %s1441_s15, %s1504_s18  ;;  %p33_p0 = scmp.ne.s32.totalorder %s1437_s14, %s1433_s13 }
   0x8   : > { %p24_p1 = scmp.eq.s32.totalorder %s23_s20, 0  ;;  %p34_p2 = scmp.eq.s32.totalorder %s1441_s15, 0 }
   0x9   : > { %p39_p3 = scmp.ne.s32.totalorder %s1433_s13, %s1429_s12  ;;  %p40_p4 = scmp.eq.s32.totalorder %s1500_s16, 0 }
   0xa   : > { %s1516_s21 = scalar_select %p24_p1, %s1437_s14, %s26_s19  }
   0xb   : > { %p1518_p5 = por %p34_p2, %p33_p0  ;;  %p1522_p6 = por %p40_p4, %p39_p3 }
   0xc   : > { %p105_p7 = scmp.eq.s32.totalorder %s1500_s16, 1  ;;  %p111_p8 = scmp.eq.s32.totalorder %s948_s17, 1 }
   0xd   : > { %p1156_p10 = scmp.lt.s32.totalorder %s1441_s15, 2  ;;  %s137_s26 = sand.u32 1, %s1437_s14  }
   0xe   : > { %p1529_p11 = por %p105_p7, %p33_p0  ;;  %p1533_p12 = por %p111_p8, %p39_p3 }
   0xf   : > { %s1045_s27 = sshll.u32 %s1441_s15, 10  ;;  %s951_s28 = sshll.u32 %s137_s26, 6 }
  0x10   : > { %s2154_s24 = scalar_select %p1529_p11, 1, 0 }
  0x11   : > { %s2155_s25 = scalar_select %p1533_p12, 1, 0 }
  0x12   : > { %s1542_s4 = scalar_lea.hbm %s2136_s0, %s1045_s27  ;;  %s141_s5 = scalar_lea.vmem [#allocation2], %s951_s28 }
  0x13   : > { %s149_s6 = sshll.u32 %s141_s5, 4  ;;  %p1546_p13 = pnand %p1156_p10, %p1518_p5  ;;  %s1550_s6 = int_to_ptr.vmem [resolvable:$true] %s149_s6 }
  0x14   : > { %s1552_s8 = scalar_lea.sflag [#allocation3], %s137_s26  ;;  %s1345_s9 = scalar_lea.hbm %s1542_s4, 1024 }
  0x15   : > { %p1346_p0 = scmp.ne.s32.totalorder %s1542_s4, %s1345_s9  ;;  %p1347_p1 = pneg %p1546_p13 }
  0x16   : > { %s1350_s17 = scalar_lea.hbm %s2136_s0, 2048  ;;  %p1351_p4 = scmp.lt.u32.totalorder %s1542_s4, %s2136_s0 }
  0x17   : > { %p1348_p2 = pnand %p1347_p1, %p1346_p0  ;;  %p1352_p5 = scmp.lt.u32.totalorder %s1350_s17, %s1345_s9 }
  0x18   : > { %p1354_p8 = scmp.lt.u32.totalorder %s1345_s9, %s1542_s4 }
  0x19   : > { %p1349_p3 = pneg %p1348_p2  ;;  %p1353_p7 = por %p1352_p5, %p1351_p4 }
  0x1b   : > { %p1355_p10 = por %p1354_p8, %p1353_p7 }
  0x1d   : > { %p1356_p9 = pnand %p1355_p10, %p1349_p3 }
  0x1f   : > { %1359 = shalt.err (!%p1356_p9)
}
  0x20   : > { %s1360_s22 = scalar_lea.vmem %s1550_s6, 1024  ;;  %s1443_s26 = smov [#allocation2]  }
  0x21   : > { %p1361_p0 = scmp.ne.s32.totalorder %s1550_s6, %s1360_s22  ;;  %s1365_s27 = sshll.u32 %s1443_s26, 4  ;;  %s1366_s27 = int_to_ptr.vmem [resolvable:$false] %s1365_s27 }
  0x22   : > { %s1367_s28 = scalar_lea.vmem %s1366_s27, 2048  ;;  %p1368_p11 = scmp.lt.s32.totalorder %s1550_s6, %s1366_s27 }
  0x23   : > { %p1363_p2 = pnand %p1361_p0, %p1347_p1  ;;  %p1369_p4 = scmp.lt.s32.totalorder %s1367_s28, %s1360_s22 }
  0x25   : > { %p1364_p12 = pneg %p1363_p2  ;;  %p1370_p5 = por %p1369_p4, %p1368_p11 }
  0x27   : > { %p1371_p7 = pnand %p1370_p5, %p1364_p12 }
  0x29   : > { %1374 = shalt.err (!%p1371_p7)
}
  0x2a   : > { %s1444_s29 = smov 256   ;;  %s1445_s30 = smov 16  }
  0x2b   : > { %1151 = dma.hbm_to_vmem [thread:$0]  (!%p1546_p13), %s1542_s4, 1024, %s1550_s6, %s1552_s8, %s1444_s29, %s1444_s29, %s1445_s30  }
  0x2c   : > { %p955_p9 = scmp.ge.s32.totalorder %s1441_s15, 1  ;;  %p157_p1 = scmp.lt.s32.totalorder %s1441_s15, 3 }
  0x2e   : > { %p158_p3 = pnand %p955_p9, %p157_p1 }
  0x2f   : > { %s1583_s5 = sand.u32 (!%p158_p3), 1, %s1433_s13  }
  0x30   : > { %161 = sbr.rel (%p158_p3) target bundleno = 486 (0x1e6), region = 32  ;;  %s956_s9 = sshll.u32 (!%p158_p3), %s1583_s5, 6 }
  0x31   : > { %s164_s10 = scalar_lea.sflag (!%p158_p3), [#allocation3], %s1583_s5  ;;  %s1589_s11 = scalar_lea.vmem (!%p158_p3), [#allocation2], %s956_s9 }
  0x37   : > { %1420 = dma.done.wait (%p1522_p6), %s164_s10, 1024  }
  0x38   : > { %1422 = vsyncadd (%p1522_p6), %s164_s10, 4294966272  ;;  %v1596_v0 = vld [vmem:[%s1589_s11 + $0x10] sm:$0xff]  ;;  %v1599_v1 = vld [vmem:[%s1589_s11 + $0x18] sm:$0xff]  ;;  %s1446_s23 = smov 17   ;;  %s1447_s4 = smov 16   ;;  %v1454_v8 = vmov 0.0   ;;  %v192_v15 = vlaneseq }
  0x39   : > { %v1602_v2 = vld [vmem:[%s1589_s11] sm:$0xff]  ;;  %v1214_v3 = vpack.i.bf16 %v1599_v1, %v1596_v0  ;;  %v1607_v4 = vld [vmem:[%s1589_s11 + $0x8] sm:$0xff]  ;;  %s1448_s6 = smov 1   ;;  %s1449_s7 = smov 15   ;;  %388 = vmatprep.mubr.f32.mxu0 %v1454_v8  ;;  %538 = vmatprep.mubr.f32.mxu1 %v1454_v8  ;;  %v1644_v10 = vld [vmem:[%s1589_s11 + $0x30] sm:$0xff]  ;;  %v1455_v13 = vmov 0  }
  0x3a   : > { %v1204_v5 = vpack.i.bf16 %v1607_v4, %v1602_v2  ;;  %s1450_s8 = smov 127   ;;  %s1451_s17 = smov 112   ;;  %v1630_v6 = vld [vmem:[%s1589_s11 + $0x20] sm:$0xff]  ;;  %v1633_v7 = vld [vmem:[%s1589_s11 + $0x28] sm:$0xff]  ;;  %v1647_v11 = vld [vmem:[%s1589_s11 + $0x38] sm:$0xff]  ;;  %1344 = vset.pattern.permute.xlu0 %v1455_v13  ;;  %v1676_v16 = vand.u32 127, %v192_v15 }
  0x3b   : > { %1215 = vrot.lane.b32.xlu1 %v1214_v3, %s1446_s23  ;;  %s1452_s19 = smov 113   ;;  %s1453_s20 = smov 111   ;;  %v1279_v9 = vpack.i.bf16 %v1633_v7, %v1630_v6  ;;  %v1289_v12 = vpack.i.bf16 %v1647_v11, %v1644_v10  ;;  %v240_v14 = vld [vmem:[%s2138_s2] sm:$0xff] }
  0x3c   : > { %1205 = vrot.lane.b32.xlu0 %v1204_v5, %s1446_s23  ;;  %v1679_v17 = vadd.s32 128, %v1676_v16  ;;  %v195_v19 = vshra.s32 %v1676_v16, 4  ;;  %v197_v22 = vand.u32 15, %v1676_v16  ;;  %vm2141_vm8 = vcmp.lt.s32.totalorder %v1676_v16, 17  ;;  %s2074_s29 = scalar_lea.vmem [#allocation5], %s956_s9  ;;  %s1047_s30 = sshll.u32 %s1500_s16, 10 }
  0x3d   : > { %vm2142_vm9 = vcmp.lt.s32.totalorder %v1676_v16, 1  ;;  %vm2144_vm10 = vcmp.lt.s32.totalorder %v1676_v16, 15  ;;  %vm2143_vm12 = vcmp.lt.s32.totalorder %v1676_v16, 16  ;;  %s875_s9 = sshll.u32 %s2074_s29, 4  ;;  %s861_s16 = scalar_lea.sflag [#allocation4], %s1583_s5  ;;  %s2089_s9 = int_to_ptr.vmem [resolvable:$true] %s875_s9 }
  0x3e   : > { %v196_v18 = vshra.s32 %v1679_v17, 4  ;;  %v198_v20 = vand.u32 15, %v1679_v17  ;;  %v199_v23 = vadd.s32 4294967295, %v195_v19  ;;  %v1691_v25 = vadd.s32 4294967295, %v197_v22  ;;  %p2222_p11 = scmp.ne.s32.totalorder %s2154_s24, 0 }
  0x3f   : > { %1220 = vrot.lane.b32.xlu1 %v1214_v3, %s1447_s4  ;;  %v1700_v30 = vadd.s32 1, %v197_v22  ;;  %v207_v17 = vadd.s32 1, %v195_v19 }
  0x40   : > { %1210 = vrot.lane.b32.xlu0 %v1204_v5, %s1447_s4  ;;  %v200_v21 = vadd.s32 4294967295, %v196_v18  ;;  %v1689_v24 = vadd.s32 4294967295, %v198_v20  ;;  %vm201_vm2 = vcmp.ge.s32.totalorder %v199_v23, 0  ;;  %vm203_vm3 = vcmp.lt.s32.totalorder %v199_v23, 16 }
  0x41   : > { %v1698_v29 = vadd.s32 1, %v198_v20  ;;  %vm1702_vm6 = vmand %vm201_vm2, %vm203_vm3  ;;  %vm2146_vm7 = vcmp.ge.s32.totalorder %v1691_v25, 0  ;;  %vm227_vm15 = vcmp.lt.s32.totalorder %v1700_v30, 16 }
  0x42   : > { %vm202_vm0 = vcmp.ge.s32.totalorder %v200_v21, 0  ;;  %vm204_vm1 = vcmp.lt.s32.totalorder %v200_v21, 16  ;;  %vm2147_vm5 = vcmp.ge.s32.totalorder %v1689_v24, 0  ;;  %vm1719_vm13 = vmand %vm1702_vm6, %vm2146_vm7 }
  0x43   : > { %1230 = vrot.lane.b32.xlu1 %v1204_v5, %s1448_s6  ;;  %vm1693_vm4 = vmand %vm202_vm0, %vm204_vm1  ;;  %vm2145_vm14 = vcmp.lt.s32.totalorder %v1698_v29, 16 }
  0x44   : > { %1225 = vrot.lane.b32.xlu0 %v1204_v5, %s1449_s7  ;;  %vm232_vm11 = vmand %vm1693_vm4, %vm2147_vm5 }
  0x45   : > { %vm1733_vm0 = vmpackc.low %vm1693_vm4, %vm232_vm11  ;;  %vm283_vm11 = vcmp.lt.s32.totalorder %v1676_v16, 127 }
  0x46   : > { %vm1751_vm1 = vmpackc.low %vm1702_vm6, %vm1719_vm13 }
  0x47   : > { %1240 = vrot.lane.b32.xlu1 %v1214_v3, %s1448_s6  ;;  %vm234_vm2 = vmand %vm1693_vm4, %vm2145_vm14 }
  0x48   : > { %1235 = vrot.lane.b32.xlu0 %v1214_v3, %s1449_s7  ;;  %vm1765_vm3 = vmand %vm1702_vm6, %vm227_vm15 }
  0x49   : > { %vm1787_vm4 = vmpackc.low %vm2147_vm5, %vm234_vm2 }
  0x4a   : > { %vm1797_vm6 = vmpackc.low %vm2146_vm7, %vm1765_vm3  ;;  %vm209_vm3 = vcmp.ge.s32.totalorder %v207_v17, 0  ;;  %vm2149_vm7 = vcmp.lt.s32.totalorder %v1676_v16, 113 }
  0x4b   : > { %1250 = vrot.lane.b32.xlu1 %v1214_v3, %s1450_s8 }
  0x4c   : > { %1245 = vrot.lane.b32.xlu0 %v1204_v5, %s1450_s8 }
  0x4f   : > { %1260 = vrot.lane.b32.xlu1 %v1204_v5, %s1451_s17 }
  0x50   : > { %1255 = vrot.lane.b32.xlu0 %v1204_v5, %s1452_s19 }
  0x53   : > { %1270 = vrot.lane.b32.xlu1 %v1214_v3, %s1451_s17 }
  0x54   : > { %1265 = vrot.lane.b32.xlu0 %v1214_v3, %s1452_s19 }
  0x57   : > { %308 = vrot.lane.b32.xlu1 %v1607_v4, %s1453_s20 }
  0x58   : > { %306 = vrot.lane.b32.xlu0 %v1602_v2, %s1453_s20 }
  0x5b   : > { %468 = vrot.lane.b32.xlu1 %v1599_v1, %s1453_s20 }
  0x5c   : > { %466 = vrot.lane.b32.xlu0 %v1596_v0, %s1453_s20 }
  0x5f   : > { %1280 = vrot.lane.b32.xlu1 %v1279_v9, %s1447_s4 }
  0x60   : > { %1275 = vrot.lane.b32.xlu0 %v1279_v9, %s1446_s23 }
  0x63   : > { %1290 = vrot.lane.b32.xlu1 %v1289_v12, %s1447_s4 }
  0x64   : > { %1285 = vrot.lane.b32.xlu0 %v1289_v12, %s1446_s23  ;;  %s2087_s23 = scalar_lea.hbm %s2139_s3, %s1047_s30 }
  0x67   : > { %1300 = vrot.lane.b32.xlu1 %v1279_v9, %s1448_s6 }
  0x68   : > { %1295 = vrot.lane.b32.xlu0 %v1279_v9, %s1449_s7 }
  0x6b   : > { %1310 = vrot.lane.b32.xlu1 %v1289_v12, %s1448_s6  ;;  %s1375_s6 = scalar_lea.vmem %s2089_s9, 1024 }
  0x6c   : > { %1305 = vrot.lane.b32.xlu0 %v1289_v12, %s1449_s7  ;;  %p1376_p6 = scmp.ne.s32.totalorder %s2089_s9, %s1375_s6  ;;  %s1457_s7 = smov [#allocation5]  }
  0x6e   : > { %p1377_p12 = pnand %p1376_p6, %p2222_p11 }
  0x6f   : > { %1320 = vrot.lane.b32.xlu1 %v1289_v12, %s1450_s8 }
  0x70   : > { %1315 = vrot.lane.b32.xlu0 %v1279_v9, %s1450_s8  ;;  %p1378_p13 = pneg %p1377_p12  ;;  %s1379_s8 = sshll.u32 %s1457_s7, 4  ;;  %s1380_s8 = int_to_ptr.vmem [resolvable:$false] %s1379_s8 }
  0x71   : > { %p1382_p8 = scmp.lt.s32.totalorder %s2089_s9, %s1380_s8 }
  0x73   : > { %1330 = vrot.lane.b32.xlu1 %v1279_v9, %s1451_s17 }
  0x74   : > { %1325 = vrot.lane.b32.xlu0 %v1279_v9, %s1452_s19  ;;  %v208_v9 = vadd.s32 1, %v196_v18 }
  0x76   : > { %vm210_vm13 = vcmp.ge.s32.totalorder %v208_v9, 0  ;;  %vm212_vm2 = vcmp.lt.s32.totalorder %v208_v9, 16 }
  0x77   : > { %1340 = vrot.lane.b32.xlu1 %v1289_v12, %s1451_s17  ;;  %s1381_s17 = scalar_lea.vmem %s1380_s8, 2048 }
  0x78   : > { %1335 = vrot.lane.b32.xlu0 %v1289_v12, %s1452_s19  ;;  %p1383_p10 = scmp.lt.s32.totalorder %s1381_s17, %s1375_s6 }
  0x7a   : > { %p1384_p0 = por %p1383_p10, %p1382_p8 }
  0x7b   : > { %619 = vrot.lane.b32.xlu1 %v1633_v7, %s1453_s20 }
  0x7c   : > { %617 = vrot.lane.b32.xlu0 %v1630_v6, %s1453_s20  ;;  %p1385_p2 = pnand %p1384_p0, %p1378_p13 }
  0x7f   : > { %770 = vrot.lane.b32.xlu1 %v1647_v11, %s1453_s20 }
  0x80   : > { %768 = vrot.lane.b32.xlu0 %v1644_v10, %s1453_s20 }
  0x84   : > { %317 = vperm.xlu0 %1344, %v240_v14  }
  0xad   : > { %v1216_v26 = vpop.permute.xlu1 %1215 }
  0xae   : > { %v1206_v27 = vpop.permute.xlu0 %1205  ;;  %v1218_v31 = vunpack.i.h.bf16 %v1216_v26  ;;  %v1217_v32 = vunpack.i.l.bf16 %v1216_v26 }
  0xaf   : > { %v1208_v34 = vunpack.i.h.bf16 %v1206_v27  ;;  %v1207_v35 = vunpack.i.l.bf16 %v1206_v27 }
  0xb0   : > { %v414_v43 = vsel %vm2141_vm8, %v1217_v32, %v1218_v31  ;;  %v415_v44 = vsel %vm2141_vm8, %v1218_v31, %v1217_v32 }
  0xb1   : > { %v1221_v36 = vpop.permute.xlu1 %1220  ;;  %v248_v45 = vsel %vm2141_vm8, %v1207_v35, %v1208_v34  ;;  %v249_v48 = vsel %vm2141_vm8, %v1208_v34, %v1207_v35  ;;  %vm211_vm8 = vcmp.lt.s32.totalorder %v207_v17, 16 }
  0xb2   : > { %v1223_v37 = vunpack.i.h.bf16 %v1221_v36  ;;  %v1222_v38 = vunpack.i.l.bf16 %v1221_v36  ;;  %v1211_v39 = vpop.permute.xlu0 %1210  ;;  %vm1837_vm5 = vmand %vm209_vm3, %vm211_vm8 }
  0xb3   : > { %v1213_v41 = vunpack.i.h.bf16 %v1211_v39  ;;  %v1212_v42 = vunpack.i.l.bf16 %v1211_v39 }
  0xb4   : > { %v422_v47 = vsel %vm2143_vm12, %v1222_v38, %v1223_v37  ;;  %v423_v49 = vsel %vm2143_vm12, %v1223_v37, %v1222_v38 }
  0xb5   : > { %v1231_v50 = vpop.permute.xlu1 %1230  ;;  %v257_v51 = vsel %vm2143_vm12, %v1212_v42, %v1213_v41  ;;  %v1072_v52 = vpack.c.bf16 %v422_v47, %v414_v43  ;;  %v258_v53 = vsel %vm2143_vm12, %v1213_v41, %v1212_v42  ;;  %v1075_v55 = vpack.c.bf16 %v423_v49, %v415_v44 }
  0xb6   : > { %v1233_v56 = vunpack.i.h.bf16 %v1231_v50  ;;  %v1232_v57 = vunpack.i.l.bf16 %v1231_v50  ;;  %v1226_v58 = vpop.permute.xlu0 %1225  ;;  %v1048_v59 = vpack.c.bf16 %v257_v51, %v248_v45  ;;  %v1051_v60 = vpack.c.bf16 %v258_v53, %v249_v48 }
  0xb7   : > { %v1228_v61 = vunpack.i.h.bf16 %v1226_v58  ;;  %v1227_v62 = vunpack.i.l.bf16 %v1226_v58  ;;  %1074 = vmatprep.subr.msk.bf16.mxu1 %vm1733_vm0, %v1072_v52 }
  0xb8   : > { %v275_v3 = vsel %vm2142_vm9, %v1232_v57, %v1233_v56  ;;  %v276_v5 = vsel %vm2142_vm9, %v1233_v56, %v1232_v57  ;;  %1050 = vmatprep.subr.msk.bf16.mxu0 %vm1733_vm0, %v1048_v59  ;;  %1077 = vmatpush1.bf16.msk.msra.mxu1 %vm1751_vm1, %v1075_v55 }
  0xb9   : > { %v266_v12 = vsel %vm2144_vm10, %v1227_v62, %v1228_v61  ;;  %v267_v13 = vsel %vm2144_vm10, %v1228_v61, %v1227_v62  ;;  %1053 = vmatpush1.bf16.msk.msra.mxu0 %vm1751_vm1, %v1051_v60  ;;  %v1241_v14 = vpop.permute.xlu1 %1240 }
  0xba   : > { %v1054_v18 = vpack.c.bf16 %v275_v3, %v266_v12  ;;  %v1057_v20 = vpack.c.bf16 %v276_v5, %v267_v13  ;;  %v1243_v21 = vunpack.i.h.bf16 %v1241_v14  ;;  %v1242_v22 = vunpack.i.l.bf16 %v1241_v14  ;;  %v1236_v23 = vpop.permute.xlu0 %1235 }
  0xbb   : > { %v1238_v27 = vunpack.i.h.bf16 %v1236_v23  ;;  %v1237_v28 = vunpack.i.l.bf16 %v1236_v23 }
  0xbc   : > { %v438_v19 = vsel %vm2142_vm9, %v1242_v22, %v1243_v21  ;;  %v439_v31 = vsel %vm2142_vm9, %v1243_v21, %v1242_v22  ;;  %1056 = vmatprep.subr.msk.bf16.mxu0 %vm1787_vm4, %v1054_v18  ;;  %vm1456_vm9 = vmmov 1  }
  0xbd   : > { %v430_v32 = vsel %vm2144_vm10, %v1237_v28, %v1238_v27  ;;  %v431_v33 = vsel %vm2144_vm10, %v1238_v27, %v1237_v28  ;;  %1059 = vmatpush1.bf16.msk.msra.mxu0 %vm1797_vm6, %v1057_v20  ;;  %v1251_v34 = vpop.permute.xlu1 %1250  ;;  %vm1817_vm12 = vmpackc.low %vm2145_vm14, %vm1456_vm9  ;;  %vm2148_vm14 = vcmp.lt.s32.totalorder %v1676_v16, 112 }
  0xbe   : > { %v1078_v35 = vpack.c.bf16 %v438_v19, %v430_v32  ;;  %v1081_v36 = vpack.c.bf16 %v439_v31, %v431_v33  ;;  %v1253_v37 = vunpack.i.h.bf16 %v1251_v34  ;;  %v1252_v38 = vunpack.i.l.bf16 %v1251_v34  ;;  %v1246_v39 = vpop.permute.xlu0 %1245  ;;  %vm1823_vm10 = vmand %vm210_vm13, %vm212_vm2  ;;  %v1936_v34 = vld [vmem:[%s2137_s1] sm:$0xff] }
  0xbf   : > { %v1248_v41 = vunpack.i.h.bf16 %v1246_v39  ;;  %v1247_v42 = vunpack.i.l.bf16 %v1246_v39  ;;  %vm1852_vm8 = vmpackc.low %vm227_vm15, %vm1456_vm9  ;;  %vm2181_vm13 = vcmp.ge.s32.totalorder %v1689_v24, 0  ;;  %vm2182_vm9 = vcmp.ge.s32.totalorder %v1691_v25, 0 }
  0xc0   : > { %v446_v44 = vsel %vm283_vm11, %v1252_v38, %v1253_v37  ;;  %v447_v45 = vsel %vm283_vm11, %v1253_v37, %v1252_v38  ;;  %1080 = vmatprep.subr.msk.bf16.mxu1 %vm1787_vm4, %v1078_v35  ;;  %vm236_vm2 = vmand %vm1823_vm10, %vm2181_vm13 }
  0xc1   : > { %v1084_v48 = vpack.c.bf16 %v447_v45, %v1599_v1  ;;  %v1087_v49 = vpack.c.bf16 %v446_v44, %v1596_v0  ;;  %v284_v50 = vsel %vm283_vm11, %v1247_v42, %v1248_v41  ;;  %v285_v51 = vsel %vm283_vm11, %v1248_v41, %v1247_v42  ;;  %1083 = vmatpush1.bf16.msk.msra.mxu1 %vm1797_vm6, %v1081_v36  ;;  %v1261_v52 = vpop.permute.xlu1 %1260  ;;  %vm1868_vm3 = vmand %vm1837_vm5, %vm2182_vm9 }
  0xc2   : > { %v1060_v1 = vpack.c.bf16 %v285_v51, %v1607_v4  ;;  %v1063_v0 = vpack.c.bf16 %v284_v50, %v1602_v2  ;;  %v1263_v55 = vunpack.i.h.bf16 %v1261_v52  ;;  %v1262_v56 = vunpack.i.l.bf16 %v1261_v52  ;;  %v1256_v57 = vpop.permute.xlu0 %1255  ;;  %vm1888_vm13 = vmpackc.low %vm1823_vm10, %vm236_vm2 }
  0xc3   : > { %v1258_v58 = vunpack.i.h.bf16 %v1256_v57  ;;  %v1257_v59 = vunpack.i.l.bf16 %v1256_v57  ;;  %1086 = vmatprep.subr.msk.bf16.mxu1 %vm1817_vm12, %v1084_v48  ;;  %vm1896_vm9 = vmpackc.low %vm1837_vm5, %vm1868_vm3  ;;  %vm2150_vm2 = vcmp.lt.s32.totalorder %v1676_v16, 111  ;;  %vm2189_vm3 = vcmp.lt.s32.totalorder %v1698_v29, 16 }
  0xc4   : > { %v302_v2 = vsel %vm2148_vm14, %v1262_v56, %v1263_v55  ;;  %v303_v24 = vsel %vm2148_vm14, %v1263_v55, %v1262_v56  ;;  %1062 = vmatprep.subr.msk.bf16.mxu0 %vm1817_vm12, %v1060_v1 }
  0xc5   : > { %v293_v60 = vsel %vm2149_vm7, %v1257_v59, %v1258_v58  ;;  %v294_v25 = vsel %vm2149_vm7, %v1258_v58, %v1257_v59  ;;  %1065 = vmatpush1.bf16.msk.msra.mxu0 %vm1852_vm8, %v1063_v0  ;;  %1089 = vmatpush1.bf16.msk.msra.mxu1 %vm1852_vm8, %v1087_v49  ;;  %v1271_v61 = vpop.permute.xlu1 %1270 }
  0xc6   : > { %v1066_v63 = vpack.c.bf16 %v303_v24, %v294_v25  ;;  %v1069_v3 = vpack.c.bf16 %v302_v2, %v293_v60  ;;  %v1273_v5 = vunpack.i.h.bf16 %v1271_v61  ;;  %v1272_v9 = vunpack.i.l.bf16 %v1271_v61  ;;  %v1266_v12 = vpop.permute.xlu0 %1265 }
  0xc7   : > { %v1268_v14 = vunpack.i.h.bf16 %v1266_v12  ;;  %v1267_v17 = vunpack.i.l.bf16 %v1266_v12 }
  0xc8   : > { %v462_v18 = vsel %vm2148_vm14, %v1272_v9, %v1273_v5  ;;  %v463_v20 = vsel %vm2148_vm14, %v1273_v5, %v1272_v9  ;;  %1068 = vmatprep.subr.msk.bf16.mxu0 %vm1888_vm13, %v1066_v63  ;;  %vm1917_vm14 = vmand %vm1823_vm10, %vm2189_vm3  ;;  %vm2151_vm10 = vcmask 588800   ;;  %vm2196_vm3 = vcmp.lt.s32.totalorder %v1676_v16, 17 }
  0xc9   : > { %v454_v21 = vsel %vm2149_vm7, %v1267_v17, %v1268_v14  ;;  %v455_v22 = vsel %vm2149_vm7, %v1268_v14, %v1267_v17  ;;  %1071 = vmatpush1.bf16.msk.msra.mxu0 %vm1896_vm9, %v1069_v3  ;;  %v309_v23 = vpop.permute.xlu1 %308  ;;  %vm1925_vm7 = vmand %vm1837_vm5, %vm227_vm15  ;;  %vm2194_vm5 = vcmp.lt.s32.totalorder %v1676_v16, 16 }
  0xca   : > { %v1090_v28 = vpack.c.bf16 %v463_v20, %v455_v22  ;;  %v1093_v19 = vpack.c.bf16 %v462_v18, %v454_v21  ;;  %v307_v31 = vpop.permute.xlu0 %306  ;;  %vm2195_vm15 = vmmov %vm2194_vm5 }
  0xcb   : > { %v311_v29 = vsel %vm2150_vm2, %v307_v31, %v309_v23  ;;  %v312_v33 = vsel %vm2150_vm2, %v309_v23, %v307_v31 }
  0xcc   : > { %972 = vmatprep.subr.msk.mxu0 %vm1917_vm14, %v312_v33  ;;  %1092 = vmatprep.subr.msk.bf16.mxu1 %vm1888_vm13, %v1090_v28 }
  0xcd   : > { %973 = vmatpush1.msk.msra.mxu0 %vm1925_vm7, %v311_v29  ;;  %1095 = vmatpush1.bf16.msk.msra.mxu1 %vm1896_vm9, %v1093_v19  ;;  %v469_v30 = vpop.permute.xlu1 %468 }
  0xce   : > { %v467_v35 = vpop.permute.xlu0 %466  ;;  %974 = vmatmul.mubr.msk.f32.vlgmr.msra.gmra.mrb[0].mxu0 %vm2151_vm10, %v1936_v34 }
  0xcf   : > { %v470_v36 = vsel %vm2150_vm2, %v467_v35, %v469_v30  ;;  %v471_v37 = vsel %vm2150_vm2, %v469_v30, %v467_v35  ;;  %689 = vmatprep.mubr.f32.mxu0 %v1454_v8  ;;  %vm2197_vm2 = vmmov %vm2196_vm3 }
  0xd0   : > { %991 = vmatprep.subr.msk.mxu1 %vm1917_vm14, %v471_v37 }
  0xd1   : > { %992 = vmatpush1.msk.msra.mxu1 %vm1925_vm7, %v470_v36  ;;  %v1281_v38 = vpop.permute.xlu1 %1280 }
  0xd2   : > { %v1283_v39 = vunpack.i.h.bf16 %v1281_v38  ;;  %v1282_v41 = vunpack.i.l.bf16 %v1281_v38  ;;  %v1276_v42 = vpop.permute.xlu0 %1275  ;;  %993 = vmatmul.mubr.msk.f32.vlgmr.msra.gmra.mrb[0].mxu1 %vm2151_vm10, %v1936_v34  ;;  %vm2198_vm10 = vmmov %vm2194_vm5 }
  0xd3   : > { %v1278_v43 = vunpack.i.h.bf16 %v1276_v42  ;;  %v1277_v44 = vunpack.i.l.bf16 %v1276_v42  ;;  %840 = vmatprep.mubr.f32.mxu1 %v1454_v8 }
  0xd4   : > { %v573_v45 = vsel %vm2194_vm5, %v1282_v41, %v1283_v39  ;;  %v574_v47 = vsel %vm2195_vm15, %v1283_v39, %v1282_v41  ;;  %vm2199_vm15 = vmmov %vm2197_vm2 }
  0xd5   : > { %v565_v48 = vsel %vm2196_vm3, %v1277_v44, %v1278_v43  ;;  %v566_v49 = vsel %vm2197_vm2, %v1278_v43, %v1277_v44  ;;  %v1291_v50 = vpop.permute.xlu1 %1290 }
  0xd6   : > { %v1096_v51 = vpack.c.bf16 %v573_v45, %v565_v48  ;;  %v1099_v52 = vpack.c.bf16 %v574_v47, %v566_v49  ;;  %v1293_v1 = vunpack.i.h.bf16 %v1291_v50  ;;  %v1292_v0 = vunpack.i.l.bf16 %v1291_v50  ;;  %v1286_v55 = vpop.permute.xlu0 %1285 }
  0xd7   : > { %v1288_v56 = vunpack.i.h.bf16 %v1286_v55  ;;  %v1287_v8 = vunpack.i.l.bf16 %v1286_v55 }
  0xd8   : > { %v724_v57 = vsel %vm2198_vm10, %v1292_v0, %v1293_v1  ;;  %v725_v58 = vsel %vm2194_vm5, %v1293_v1, %v1292_v0  ;;  %1098 = vmatprep.subr.msk.bf16.mxu0 %vm1733_vm0, %v1096_v51  ;;  %vm2200_vm10 = vcmp.lt.s32.totalorder %v1676_v16, 1  ;;  %vm2202_vm5 = vcmp.lt.s32.totalorder %v1676_v16, 15 }
  0xd9   : > { %v716_v59 = vsel %vm2199_vm15, %v1287_v8, %v1288_v56  ;;  %v717_v4 = vsel %vm2197_vm2, %v1288_v56, %v1287_v8  ;;  %1101 = vmatpush1.bf16.msk.msra.mxu0 %vm1751_vm1, %v1099_v52  ;;  %v1301_v2 = vpop.permute.xlu1 %1300  ;;  %vm2201_vm3 = vmmov %vm2200_vm10 }
  0xda   : > { %v1120_v24 = vpack.c.bf16 %v724_v57, %v716_v59  ;;  %v1123_v60 = vpack.c.bf16 %v725_v58, %v717_v4  ;;  %v1303_v25 = vunpack.i.h.bf16 %v1301_v2  ;;  %v1302_v61 = vunpack.i.l.bf16 %v1301_v2  ;;  %v1296_v63 = vpop.permute.xlu0 %1295  ;;  %vm2203_vm15 = vmmov %vm2202_vm5 }
  0xdb   : > { %v1298_v3 = vunpack.i.h.bf16 %v1296_v63  ;;  %v1297_v5 = vunpack.i.l.bf16 %v1296_v63  ;;  %vm2204_vm2 = vmmov %vm2201_vm3 }
  0xdc   : > { %v589_v9 = vsel %vm2200_vm10, %v1302_v61, %v1303_v25  ;;  %v590_v12 = vsel %vm2201_vm3, %v1303_v25, %v1302_v61  ;;  %1122 = vmatprep.subr.msk.bf16.mxu1 %vm1733_vm0, %v1120_v24  ;;  %vm2205_vm0 = vmmov %vm2204_vm2 }
  0xdd   : > { %v581_v14 = vsel %vm2202_vm5, %v1297_v5, %v1298_v3  ;;  %v582_v17 = vsel %vm2203_vm15, %v1298_v3, %v1297_v5  ;;  %1125 = vmatpush1.bf16.msk.msra.mxu1 %vm1751_vm1, %v1123_v60  ;;  %v1311_v18 = vpop.permute.xlu1 %1310  ;;  %vm2206_vm10 = vmmov %vm2202_vm5 }
  0xde   : > { %v1102_v20 = vpack.c.bf16 %v589_v9, %v581_v14  ;;  %v1105_v21 = vpack.c.bf16 %v590_v12, %v582_v17  ;;  %v1313_v22 = vunpack.i.h.bf16 %v1311_v18  ;;  %v1312_v23 = vunpack.i.l.bf16 %v1311_v18  ;;  %v1306_v28 = vpop.permute.xlu0 %1305  ;;  %vm2207_vm1 = vmmov %vm2202_vm5 }
  0xdf   : > { %v1308_v19 = vunpack.i.h.bf16 %v1306_v28  ;;  %v1307_v31 = vunpack.i.l.bf16 %v1306_v28 }
  0xe0   : > { %v740_v46 = vsel %vm2204_vm2, %v1312_v23, %v1313_v22  ;;  %v741_v29 = vsel %vm2205_vm0, %v1313_v22, %v1312_v23  ;;  %1104 = vmatprep.subr.msk.bf16.mxu0 %vm1787_vm4, %v1102_v20  ;;  %vm2216_vm2 = vcmp.lt.s32.totalorder %v1676_v16, 111 }
  0xe1   : > { %v732_v54 = vsel %vm2206_vm10, %v1307_v31, %v1308_v19  ;;  %v733_v33 = vsel %vm2207_vm1, %v1308_v19, %v1307_v31  ;;  %1107 = vmatpush1.bf16.msk.msra.mxu0 %vm1797_vm6, %v1105_v21  ;;  %v1321_v30 = vpop.permute.xlu1 %1320  ;;  %vm2217_vm0 = vmmov %vm2216_vm2  ;;  %vm2218_vm10 = vcmask 588800  }
  0xe2   : > { %v1126_v35 = vpack.c.bf16 %v740_v46, %v732_v54  ;;  %v1129_v36 = vpack.c.bf16 %v741_v29, %v733_v33  ;;  %v1323_v37 = vunpack.i.h.bf16 %v1321_v30  ;;  %v1322_v38 = vunpack.i.l.bf16 %v1321_v30  ;;  %v1316_v39 = vpop.permute.xlu0 %1315  ;;  %vm2219_vm1 = vmmov %vm2217_vm0 }
  0xe3   : > { %v1318_v41 = vunpack.i.h.bf16 %v1316_v39  ;;  %v1317_v42 = vunpack.i.l.bf16 %v1316_v39 }
  0xe4   : > { %v748_v43 = vsel %vm283_vm11, %v1322_v38, %v1323_v37  ;;  %v749_v44 = vsel %vm283_vm11, %v1323_v37, %v1322_v38  ;;  %1128 = vmatprep.subr.msk.bf16.mxu1 %vm1787_vm4, %v1126_v35  ;;  %vm2208_vm4 = vcmp.lt.s32.totalorder %v1676_v16, 112 }
  0xe5   : > { %v1132_v45 = vpack.c.bf16 %v749_v44, %v1647_v11  ;;  %v1135_v47 = vpack.c.bf16 %v748_v43, %v1644_v10  ;;  %v597_v48 = vsel %vm283_vm11, %v1317_v42, %v1318_v41  ;;  %v598_v49 = vsel %vm283_vm11, %v1318_v41, %v1317_v42  ;;  %1131 = vmatpush1.bf16.msk.msra.mxu1 %vm1797_vm6, %v1129_v36  ;;  %v1331_v50 = vpop.permute.xlu1 %1330  ;;  %vm2209_vm11 = vmmov %vm2208_vm4 }
  0xe6   : > { %v1108_v51 = vpack.c.bf16 %v598_v49, %v1633_v7  ;;  %v1111_v52 = vpack.c.bf16 %v597_v48, %v1630_v6  ;;  %v1333_v15 = vunpack.i.h.bf16 %v1331_v50  ;;  %v1332_v1 = vunpack.i.l.bf16 %v1331_v50  ;;  %v1326_v0 = vpop.permute.xlu0 %1325  ;;  %vm2213_vm5 = vmmov %vm2208_vm4 }
  0xe7   : > { %v1328_v11 = vunpack.i.h.bf16 %v1326_v0  ;;  %v1327_v55 = vunpack.i.l.bf16 %v1326_v0  ;;  %1134 = vmatprep.subr.msk.bf16.mxu1 %vm1817_vm12, %v1132_v45  ;;  %vm2210_vm6 = vcmp.lt.s32.totalorder %v1676_v16, 113 }
  0xe8   : > { %v613_v10 = vsel %vm2208_vm4, %v1332_v1, %v1333_v15  ;;  %v614_v26 = vsel %vm2209_vm11, %v1333_v15, %v1332_v1  ;;  %1110 = vmatprep.subr.msk.bf16.mxu0 %vm1817_vm12, %v1108_v51  ;;  %vm2211_vm3 = vmmov %vm2210_vm6 }
  0xe9   : > { %v605_v6 = vsel %vm2210_vm6, %v1327_v55, %v1328_v11  ;;  %v606_v7 = vsel %vm2211_vm3, %v1328_v11, %v1327_v55  ;;  %1113 = vmatpush1.bf16.msk.msra.mxu0 %vm1852_vm8, %v1111_v52  ;;  %1137 = vmatpush1.bf16.msk.msra.mxu1 %vm1852_vm8, %v1135_v47  ;;  %v1341_v56 = vpop.permute.xlu1 %1340  ;;  %vm2212_vm12 = vmmov %vm2208_vm4 }
  0xea   : > { %v1114_v8 = vpack.c.bf16 %v614_v26, %v606_v7  ;;  %v1117_v57 = vpack.c.bf16 %v613_v10, %v605_v6  ;;  %v1343_v58 = vunpack.i.h.bf16 %v1341_v56  ;;  %v1342_v59 = vunpack.i.l.bf16 %v1341_v56  ;;  %v1336_v4 = vpop.permute.xlu0 %1335  ;;  %vm2214_vm15 = vmmov %vm2211_vm3 }
  0xeb   : > { %v1338_v40 = vunpack.i.h.bf16 %v1336_v4  ;;  %v1337_v2 = vunpack.i.l.bf16 %v1336_v4  ;;  %vm2215_vm8 = vmmov %vm2211_vm3 }
  0xec   : > { %v764_v24 = vsel %vm2212_vm12, %v1342_v59, %v1343_v58  ;;  %v765_v60 = vsel %vm2213_vm5, %v1343_v58, %v1342_v59  ;;  %1116 = vmatprep.subr.msk.bf16.mxu0 %vm1888_vm13, %v1114_v8  ;;  %vm2220_vm4 = vmmov %vm2217_vm0 }
  0xed   : > { %v756_v53 = vsel %vm2214_vm15, %v1337_v2, %v1338_v40  ;;  %v757_v25 = vsel %vm2215_vm8, %v1338_v40, %v1337_v2  ;;  %1119 = vmatpush1.bf16.msk.msra.mxu0 %vm1896_vm9, %v1117_v57  ;;  %v620_v61 = vpop.permute.xlu1 %619 }
  0xee   : > { %v1138_v63 = vpack.c.bf16 %v765_v60, %v757_v25  ;;  %v1141_v3 = vpack.c.bf16 %v764_v24, %v756_v53  ;;  %v618_v5 = vpop.permute.xlu0 %617 }
  0xef   : > { %v621_v9 = vsel %vm2216_vm2, %v618_v5, %v620_v61  ;;  %v622_v12 = vsel %vm2217_vm0, %v620_v61, %v618_v5 }
  0xf0   : > { %1012 = vmatprep.subr.msk.mxu0 %vm1917_vm14, %v622_v12  ;;  %1140 = vmatprep.subr.msk.bf16.mxu1 %vm1888_vm13, %v1138_v63  ;;  %vm2221_vm13 = vmmov %vm2218_vm10 }
  0xf1   : > { %1013 = vmatpush1.msk.msra.mxu0 %vm1925_vm7, %v621_v9  ;;  %1143 = vmatpush1.bf16.msk.msra.mxu1 %vm1896_vm9, %v1141_v3  ;;  %v771_v14 = vpop.permute.xlu1 %770 }
  0xf2   : > { %v769_v17 = vpop.permute.xlu0 %768  ;;  %1014 = vmatmul.mubr.msk.f32.vlgmr.msra.gmra.mrb[2].mxu0 %vm2218_vm10, %v1936_v34 }
  0xf3   : > { %v772_v18 = vsel %vm2219_vm1, %v769_v17, %v771_v14  ;;  %v773_v20 = vsel %vm2220_vm4, %v771_v14, %v769_v17 }
  0xf4   : > { %1033 = vmatprep.subr.msk.mxu1 %vm1917_vm14, %v773_v20 }
  0xf5   : > { %1034 = vmatpush1.msk.msra.mxu1 %vm1925_vm7, %v772_v18 }
  0xf6   : > { %1035 = vmatmul.mubr.msk.f32.vlgmr.msra.gmra.mrb[2].mxu1 %vm2221_vm13, %v1936_v34 }
 0x103   : > { %v318_v62 = vpop.permute.xlu0 %317 }
 0x1a1   : > { %v390_v13 = vpop.f32.mrb[0].mxu0 }
 0x1a2   : > { %v391_v21 = vadd.f32 %v390_v13, %v318_v62  ;;  %v392_v22 = vpop.f32.mrb[1].mxu0 }
 0x1a3   : > { %v393_v23 = vadd.f32 %v392_v22, %v318_v62 }
 0x1a4   : > { %v395_v28 = vadd.f32 3.0, %v391_v21 }
 0x1a5   : > { %v540_v19 = vpop.f32.mrb[0].mxu1  ;;  %v396_v31 = vadd.f32 3.0, %v393_v23 }
 0x1a6   : > { %v397_v46 = vmax.f32 %v395_v28, 0.0  ;;  %v541_v16 = vadd.f32 %v540_v19, %v318_v62  ;;  %v542_v29 = vpop.f32.mrb[1].mxu1 }
 0x1a7   : > { %v398_v27 = vmax.f32 %v396_v31, 0.0  ;;  %v543_v54 = vadd.f32 %v542_v29, %v318_v62 }
 0x1a8   : > { %v399_v33 = vmin.f32 %v397_v46, 6.0  ;;  %v545_v32 = vadd.f32 3.0, %v541_v16 }
 0x1a9   : > { %v400_v30 = vmin.f32 %v398_v27, 6.0  ;;  %v546_v35 = vadd.f32 3.0, %v543_v54 }
 0x1aa   : > { %v401_v36 = vmul.f32 %v399_v33, %v391_v21  ;;  %v547_v34 = vmax.f32 %v545_v32, 0.0 }
 0x1ab   : > { %v402_v37 = vmul.f32 %v400_v30, %v393_v23  ;;  %v548_v38 = vmax.f32 %v546_v35, 0.0 }
 0x1ac   : > { %v403_v39 = vmul.f32 0.16666667, %v401_v36  ;;  %v549_v41 = vmin.f32 %v547_v34, 6.0 }
 0x1ad   : > { %v404_v42 = vmul.f32 0.16666667, %v402_v37  ;;  %v550_v43 = vmin.f32 %v548_v38, 6.0 }
 0x1ae   : > { %405 = vst [vmem:[%s2074_s29] sm:$0xff] %v403_v39  ;;  %v551_v44 = vmul.f32 %v549_v41, %v541_v16 }
 0x1af   : > { %406 = vst [vmem:[%s2074_s29 + $0x8] sm:$0xff] %v404_v42  ;;  %v552_v45 = vmul.f32 %v550_v43, %v543_v54 }
 0x1b0   : > { %v553_v47 = vmul.f32 0.16666667, %v551_v44 }
 0x1b1   : > { %v554_v48 = vmul.f32 0.16666667, %v552_v45 }
 0x1b2   : > { %994 = vst [vmem:[%s2074_s29 + $0x10] sm:$0xff] %v553_v47 }
 0x1b3   : > { %995 = vst [vmem:[%s2074_s29 + $0x18] sm:$0xff] %v554_v48 }
 0x1c5   : > { %v691_v49 = vpop.f32.mrb[2].mxu0 }
 0x1c6   : > { %v692_v50 = vadd.f32 %v691_v49, %v318_v62  ;;  %v693_v51 = vpop.f32.mrb[3].mxu0 }
 0x1c7   : > { %v694_v52 = vadd.f32 %v693_v51, %v318_v62 }
 0x1c8   : > { %v696_v15 = vadd.f32 3.0, %v692_v50 }
 0x1c9   : > { %v697_v1 = vadd.f32 3.0, %v694_v52  ;;  %v842_v0 = vpop.f32.mrb[2].mxu1 }
 0x1ca   : > { %v698_v11 = vmax.f32 %v696_v15, 0.0  ;;  %v843_v55 = vadd.f32 %v842_v0, %v318_v62  ;;  %v844_v10 = vpop.f32.mrb[3].mxu1 }
 0x1cb   : > { %v699_v26 = vmax.f32 %v697_v1, 0.0  ;;  %v845_v6 = vadd.f32 %v844_v10, %v318_v62 }
 0x1cc   : > { %v700_v7 = vmin.f32 %v698_v11, 6.0  ;;  %v847_v56 = vadd.f32 3.0, %v843_v55 }
 0x1cd   : > { %v701_v8 = vmin.f32 %v699_v26, 6.0  ;;  %v848_v57 = vadd.f32 3.0, %v845_v6 }
 0x1ce   : > { %v702_v58 = vmul.f32 %v700_v7, %v692_v50  ;;  %v849_v59 = vmax.f32 %v847_v56, 0.0 }
 0x1cf   : > { %v703_v4 = vmul.f32 %v701_v8, %v694_v52  ;;  %v850_v40 = vmax.f32 %v848_v57, 0.0 }
 0x1d0   : > { %v704_v2 = vmul.f32 0.16666667, %v702_v58  ;;  %v851_v24 = vmin.f32 %v849_v59, 6.0 }
 0x1d1   : > { %v705_v60 = vmul.f32 0.16666667, %v703_v4  ;;  %v852_v53 = vmin.f32 %v850_v40, 6.0 }
 0x1d2   : > { %1015 = vst [vmem:[%s2074_s29 + $0x20] sm:$0xff] %v704_v2  ;;  %v853_v25 = vmul.f32 %v851_v24, %v843_v55 }
 0x1d3   : > { %1016 = vst [vmem:[%s2074_s29 + $0x28] sm:$0xff] %v705_v60  ;;  %v854_v61 = vmul.f32 %v852_v53, %v845_v6 }
 0x1d4   : > { %v855_v63 = vmul.f32 0.16666667, %v853_v25 }
 0x1d5   : > { %v856_v3 = vmul.f32 0.16666667, %v854_v61 }
 0x1d6   : > { %1036 = vst [vmem:[%s2074_s29 + $0x30] sm:$0xff] %v855_v63 }
 0x1d7   : > { %1037 = vst [vmem:[%s2074_s29 + $0x38] sm:$0xff] %v856_v3 }
 0x1d8   : > { %1388 = shalt.err (!%p1385_p2)
}
 0x1d9   : > { %s1389_s19 = scalar_lea.hbm %s2087_s23, 1024  ;;  %s1393_s26 = scalar_lea.hbm %s2139_s3, 2048 }
 0x1da   : > { %p1390_p4 = scmp.ne.s32.totalorder %s2087_s23, %s1389_s19  ;;  %p1394_p9 = scmp.lt.u32.totalorder %s2087_s23, %s2139_s3 }
 0x1db   : > { %p1395_p1 = scmp.lt.u32.totalorder %s1393_s26, %s1389_s19  ;;  %p1397_p6 = scmp.lt.u32.totalorder %s1389_s19, %s2087_s23 }
 0x1dc   : > { %p1391_p5 = pnand %p1390_p4, %p2222_p11 }
 0x1dd   : > { %p1396_p3 = por %p1395_p1, %p1394_p9 }
 0x1de   : > { %p1392_p7 = pneg %p1391_p5 }
 0x1df   : > { %p1398_p12 = por %p1397_p6, %p1396_p3 }
 0x1e1   : > { %p1399_p13 = pnand %p1398_p12, %p1392_p7 }
 0x1e3   : > { %1402 = shalt.err (!%p1399_p13)
}
 0x1e4   : > { %s1458_s29 = smov 256  }
 0x1e5   : > { %1146 = dma.vmem_to_hbm [thread:$0]  (%p2222_p11), %s2089_s9, 1024, %s2087_s23, %s861_s16, %s1458_s29, %s1458_s29, %s1447_s4  }
 0x1e6 PF: > { %s890_s30 = sand.u32 1, %s1429_s12   ;;  %p2223_p8 = scmp.ne.s32.totalorder %s2155_s25, 0 }
 0x1e7   : > { %p2224_p10 = scmp.ge.s32.totalorder %s1441_s15, 2  ;;  %s891_s10 = scalar_lea.sflag [#allocation4], %s890_s30 }
 0x1e9   : > { %p1153_p0 = pnand %p2224_p10, %p2223_p8 }
 0x1eb   : > { %1424 = dma.done.wait (!%p1153_p0), %s891_s10, 1024  }
 0x1ec   : > { %1426 = vsyncadd (!%p1153_p0), %s891_s10, 4294966272  ;;  %p16_p2 = scmp.ge.s32.totalorder %s1504_s18, 4   ;;  %s2225_s12 = smov %s1433_s13 }
 0x1ed   : > { %s2226_s13 = smov %s1437_s14  ;;  %s2227_s14 = smov %s1516_s21 }
 0x1ee   : > { %s2228_s15 = smov %s1504_s18  ;;  %18 = sbr.rel (!%p16_p2) target bundleno = 5 (0x5), region = 83 }
 0x1f5   :  { %896 = vsyncpa [#allocation3], 1 }
 0x1f6   :  { %898 = vsyncpa [#allocation3 + $0x1], 1 }
 0x1f7   :  { %899 = vsyncpa [#allocation4], 1 }
 0x1f8   :  { %901 = vsyncpa [#allocation4 + $0x1], 1 }

</bundles_post_ra>
